<compile_context>
chip_gen: v5e
topology: v5e:2x2
jax: 0.10.0
libtpu: 0.0.40
codegen_flags: <defaults>
</compile_context>

<pallas_src>
import jax
import jax.numpy as jnp
from jax.experimental import pallas as pl
from jax.experimental.pallas import tpu as pltpu


def _consequent_kernel(coeff_ref, o_ref):
    # coeff_ref: (1, D_pad)    fused (d_out, n_rules) coeff row on the lane axis
    # o_ref:     (TILE_N, D_pad)
    # y[b, :] = coeff_row  (== matmul(coeff, ones(n,1).T) with the K=1 axis
    # folded away; multiplying by 1.0 is bit-exact).
    o_ref[...] = jnp.broadcast_to(coeff_ref[...], o_ref.shape)


def _round_up(n, m):
    return ((n + m - 1) // m) * m


def _select_tile_n(n_cases, d_pad, itemsize):
    """Batch tile: ~4 MiB written per grid step, <=12 MiB of double-buffered
    output VMEM, sublane (8-row) aligned, and >=2 grid steps when the batch is
    big enough for megacore sharding to matter."""
    if n_cases <= 8:
        return n_cases                        # single block == full tiny batch
    target_bytes = 4 << 20                    # ~4 MiB written per step
    vmem_cap_bytes = 12 << 20                 # cap on 2 * tn * d_pad * itemsize
    tn = target_bytes // (d_pad * itemsize)
    tn = min(tn, vmem_cap_bytes // (2 * d_pad * itemsize))
    tn = max(8, (tn // 8) * 8)                # sublane aligned
    tn = min(tn, _round_up(n_cases, 8))       # never larger than the batch
    if n_cases >= 16:                         # keep >= 2 grid steps (megacore)
        tn = min(tn, max(8, _round_up(pl.cdiv(n_cases, 2), 8)))
    return tn


def consequent_forward(x, coeff):
    """Pallas forward pass of ConsequentLayer.

    x:     (n_cases, n_in)    -- only the batch length is used (as in torch)
    coeff: (n_rules, d_out, 1)
    returns: (n_cases, d_out, n_rules)
    """
    n_cases = x.shape[0]
    n_rules, d_out, k = coeff.shape
    assert k == 1, "ConsequentLayer coeff last dim is 1 (one constant per rule/output)"
    out_dtype = coeff.dtype
    itemsize = jnp.dtype(out_dtype).itemsize

    # Lane layout: (d_out, n_rules) flattened row-major so the final 3-D view
    # (n_cases, d_out, n_rules) is a free reshape.  Zero-pad the lane axis to
    # a multiple of 128 so every store is a full-width (unmasked) vst.
    d = d_out * n_rules
    d_pad = _round_up(d, 128)
    coeff_row = jnp.transpose(coeff[:, :, 0]).reshape(1, d)
    if d_pad != d:
        coeff_row = jnp.pad(coeff_row, ((0, 0), (0, d_pad - d)))

    tn = _select_tile_n(n_cases, d_pad, itemsize)

    out = pl.pallas_call(
        _consequent_kernel,
        out_shape=jax.ShapeDtypeStruct((n_cases, d_pad), out_dtype),
        grid=(pl.cdiv(n_cases, tn),),
        in_specs=[
            # Grid-invariant coeff row (tiny; default buffering is fine).
            pl.BlockSpec((1, d_pad), lambda i: (0, 0)),
        ],
        out_specs=pl.BlockSpec((tn, d_pad), lambda i: (i, 0)),
        compiler_params=pltpu.CompilerParams(
            dimension_semantics=("parallel",),     # shard batch axis on megacore
            vmem_limit_bytes=32 * 1024 * 1024,     # headroom over v5e's 16 MiB default
        ),
    )(coeff_row)

    if d_pad != d:
        out = out[:, :d]
    return out.reshape(n_cases, d_out, n_rules)


def consequent_reference(x, coeff):
    """Pure-JAX mirror of the torch forward (ground truth for the check)."""
    n_cases = x.shape[0]
    x_plus = jnp.ones((n_cases, 1), dtype=coeff.dtype)
    y_pred = jnp.matmul(coeff, x_plus.T)          # (n_rules, d_out, n_cases)
    return jnp.transpose(y_pred, (2, 1, 0))       # (n_cases, d_out, n_rules)


if __name__ == "__main__":
    key = jax.random.PRNGKey(0)
    kx, kc = jax.random.split(key)

    # Small shapes consistent with the module:
    #   n_in = n_mfdefs = 4 input variables, n_terms = 2 MFs each
    #   -> n_rules = n_terms ** n_mfdefs = 16, d_out = 8
    #   -> lane width d_out * n_rules = 128 (fully lane-dense output)
    n_cases, n_in = 32, 4
    n_terms, n_mfdefs = 2, 4
    n_rules = n_terms ** n_mfdefs          # 16
    d_out = 8

    x = jax.random.normal(kx, (n_cases, n_in), dtype=jnp.float32)
    # Non-trivial coefficients (as if set after fit_coeff / the coeff setter;
    # the module's zero-init would make the check degenerate).
    coeff = jax.random.normal(kc, (n_rules, d_out, 1), dtype=jnp.float32)

    y = consequent_forward(x, coeff)
    y = jax.block_until_ready(y)

    y_ref = consequent_reference(x, coeff)
    assert y.shape == (n_cases, d_out, n_rules)
    assert jnp.allclose(y, y_ref, atol=1e-6, rtol=1e-6)

    # TODO(synk): fit_coeff (torch.lstsq LSE solve) is a training-time host
    # routine, not part of forward, and is intentionally not a Pallas kernel.

    print("KERNEL_OK")
</pallas_src>

<mosaic_0001>
module attributes {stable_mosaic.version = 11 : i64} {
  func.func @_consequent_kernel(%arg0: i32, %arg1: memref<1x128xf32, #tpu.memory_space<vmem>>, %arg2: memref<16x128xf32, #tpu.memory_space<vmem>>) attributes {dimension_semantics = [#tpu.dimension_semantics<parallel>], iteration_bounds = array<i64: 2>, scalar_prefetch = 0 : i64, scratch_operands = 0 : i64, tpu.core_type = #tpu.core_type<tc>, window_params = [{pipeline_mode = #tpu.pipeline_mode<synchronous>, transform_indices = @transform_0, window_bounds = array<i64: 1, 128>}, {transform_indices = @transform_1, window_bounds = array<i64: 16, 128>}]} {
    %c0 = arith.constant 0 : index
    %c0_0 = arith.constant 0 : index
    %0 = vector.load %arg1[%c0, %c0_0] : memref<1x128xf32, #tpu.memory_space<vmem>>, vector<1x128xf32>
    %1 = vector.shape_cast %0 : vector<1x128xf32> to vector<1x128xf32>
    %2 = vector.broadcast %1 : vector<1x128xf32> to vector<16x128xf32>
    %c0_1 = arith.constant 0 : index
    %c0_2 = arith.constant 0 : index
    %3 = vector.load %arg2[%c0_1, %c0_2] : memref<16x128xf32, #tpu.memory_space<vmem>>, vector<16x128xf32>
    tpu.vector_store %arg2[%c0_1, %c0_2], %2 {strides = array<i32>} : memref<16x128xf32, #tpu.memory_space<vmem>>, vector<16x128xf32>,
    return
  }
  func.func @transform_0(%arg0: i32) -> (i32, i32) {
    %c0_i32 = arith.constant 0 : i32
    %c0_i32_0 = arith.constant 0 : i32
    %c0_i32_1 = arith.constant 0 : i32
    return %c0_i32, %c0_i32_0 : i32, i32
  }
  func.func @transform_1(%arg0: i32) -> (i32, i32) {
    %c0_i32 = arith.constant 0 : i32
    %c0_i32_0 = arith.constant 0 : i32
    return %arg0, %c0_i32 : i32, i32
  }
}

</mosaic_0001>

<bundles_post_ra>
// kernel: tpu_custom_call.1
= control target key start
LH: loop header
LB: loop body
LE: loop exit
PB: predicated region body
PF: predicated region fallthrough
CT: control target
= control target key end

     0   :  { %6 = vsyncpa [#allocation3], 0  ;;  %s455_s0 = inlined_call_operand.hbm [shape: f32[1,128], index: 0, kind: input, shape index: {}]   ;;  %s456_s1 = inlined_call_operand.hbm [shape: f32[32,128], index: 1, kind: output, shape index: {}]  }
   0x1   :  { %7 = vsyncpa [#allocation4], 0 }
   0x2   :  { %9 = vsyncpa [#allocation4 + $0x1], 0  ;;  %s371_s6 = smov 0   ;;  %s373_s7 = smov 0  }
   0x3   :  { %s375_s8 = smov 0   ;;  %s377_s9 = smov 0  }
   0x4 LB: > { %s392_s10 = sadd.s32 4294967295, %s356_s9   ;;  %s195_s11 = sadd.s32 4294967294, %s356_s9   ;;  %s356_s9 = sphi %s377_s9, %s462_s9   ;;  %s352_s8 = sphi %s375_s8, %s461_s8   ;;  %s348_s7 = sphi %s373_s7, %s460_s7   ;;  %s344_s6 = sphi %s371_s6, %s459_s6  }
   0x5   : > { %s396_s12 = sadd.s32 1, %s356_s9   ;;  %s43_s13 = sadd.s32 1, %s352_s8 }
   0x6   : > { %s40_s14 = ssub.s32 %s356_s9, %s396_s12  ;;  %p53_p0 = scmp.ne.s32.totalorder %s352_s8, %s348_s7 }
   0x7   : > { %p41_p1 = scmp.eq.s32.totalorder %s40_s14, 0  ;;  %p54_p2 = scmp.eq.s32.totalorder %s392_s10, 1 }
   0x8   : > { %p59_p3 = scmp.ne.s32.totalorder %s348_s7, %s344_s6  ;;  %p60_p4 = scmp.eq.s32.totalorder %s195_s11, 1 }
   0x9   : > { %s407_s15 = scalar_select %p41_p1, %s352_s8, %s43_s13  }
   0xa   : > { %p409_p5 = por %p54_p2, %p53_p0  ;;  %p413_p6 = por %p60_p4, %p59_p3 }
   0xb   : > { %p196_p7 = scmp.ge.s32.totalorder %s356_s9, 1  ;;  %p67_p8 = scmp.lt.s32.totalorder %s356_s9, 3 }
   0xc   : > { %p221_p9 = scmp.eq.s32.totalorder %s392_s10, 0  ;;  %s79_s20 = sshll.u32 %s455_s0, 4  ;;  %s80_s20 = int_to_ptr.hbm [resolvable:$true] %s79_s20 }
   0xd   : > { %p68_p10 = pnand %p196_p7, %p67_p8  ;;  %s358_s21 = smov [#allocation2]  }
   0xe   : > { %s81_s22 = sshll.u32 %s358_s21, 4  ;;  %s82_s22 = int_to_ptr.vmem [resolvable:$true] %s81_s22 }
   0xf   : > { %p213_p11 = pneg %p68_p10  ;;  %94 = sbr.rel (%p68_p10) target bundleno = 38 (0x26), region = 24 }
  0x11   : > { %p214_p12 = pnand %p221_p9, %p213_p11 }
  0x13   : > { %216 = dma.hbm_to_vmem [thread:$0]  (!%p214_p12), %s80_s20, 16, %s82_s22, [#allocation3]  }
  0x14   : > { %335 = dma.done.wait (%p221_p9), [#allocation3], 16  }
  0x15   : > { %337 = vsyncadd (%p221_p9), [#allocation3], 4294967280  ;;  %s107_s23 = sand.u32 1, %s348_s7   ;;  %s206_s24 = sshll.u32 %s392_s10, 4  ;;  %v259_v0 = vld [vmem:[#allocation2] ss:$0 sm:$0xff] }
  0x16   : > { %s200_s25 = sshll.u32 %s107_s23, 4  ;;  %s129_s28 = scalar_lea.hbm %s456_s1, %s206_s24 }
  0x17   : > { %s109_s29 = scalar_lea.vmem [#allocation5], %s200_s25  ;;  %s132_s2 = sshll.u32 %s129_s28, 4  ;;  %s133_s2 = int_to_ptr.hbm [resolvable:$true] %s132_s2 }
  0x18   : > { %s130_s30 = sshll.u32 %s109_s29, 4  ;;  %115 = vst [vmem:[%s109_s29] sm:$0xff] %v259_v0  ;;  %s118_s3 = scalar_lea.sflag [#allocation4], %s107_s23  ;;  %s131_s30 = int_to_ptr.vmem [resolvable:$true] %s130_s30 }
  0x19   : > { %116 = vst [vmem:[%s109_s29 + $0x8] sm:$0xff] %v259_v0  ;;  %s304_s4 = sshra.s32 %s133_s2, 4  ;;  %s310_s13 = scalar_lea.hbm %s456_s1, 32  ;;  %s305_s4 = int_to_ptr.hbm [resolvable:$true] %s304_s4 }
  0x1a   : > { %s306_s5 = scalar_lea.hbm %s305_s4, 16  ;;  %p311_p2 = scmp.lt.s32.totalorder %s305_s4, %s456_s1 }
  0x1b   : > { %p307_p13 = scmp.ne.s32.totalorder %s305_s4, %s306_s5  ;;  %p312_p3 = scmp.lt.s32.totalorder %s310_s13, %s306_s5 }
  0x1d   : > { %p308_p0 = pnand %p307_p13, %p409_p5  ;;  %p313_p4 = por %p312_p3, %p311_p2 }
  0x1f   : > { %p309_p1 = pneg %p308_p0 }
  0x21   : > { %p314_p7 = pnand %p313_p4, %p309_p1 }
  0x23   : > { %317 = shalt.err (!%p314_p7)
}
  0x24   : > { %s359_s19 = smov 128   ;;  %s360_s20 = smov 8  }
  0x25   : > { %211 = dma.vmem_to_hbm [thread:$0]  (%p409_p5), %s131_s30, 256, %s133_s2, %s118_s3, %s359_s19, %s359_s19, %s360_s20  }
  0x26 PF: > { %p223_p8 = scmp.ge.s32.totalorder %s356_s9, 2  ;;  %s147_s21 = sand.u32 1, %s344_s6  }
  0x27   : > { %s148_s22 = scalar_lea.sflag [#allocation4], %s147_s21 }
  0x28   : > { %p218_p9 = pnand %p223_p8, %p413_p6 }
  0x2a   : > { %p219_p10 = pneg %p218_p9 }
  0x2c   : > { %339 = dma.done.wait (%p219_p10), %s148_s22, 256  }
  0x2d   : > { %341 = vsyncadd (%p219_p10), %s148_s22, 4294967040  ;;  %p12_p11 = scmp.ge.s32.totalorder %s396_s12, 4   ;;  %s459_s6 = smov %s348_s7 }
  0x2e   : > { %s460_s7 = smov %s352_s8  ;;  %s461_s8 = smov %s407_s15 }
  0x2f   : > { %s462_s9 = smov %s396_s12  ;;  %14 = sbr.rel (!%p12_p11) target bundleno = 4 (0x4), region = 61 }
  0x34   :  { %154 = vsyncpa [#allocation3], 1 }
  0x35   :  { %156 = vsyncpa [#allocation3 + $0x1], 1 }
  0x36   :  { %157 = vsyncpa [#allocation4], 1 }
  0x37   :  { %159 = vsyncpa [#allocation4 + $0x1], 1 }

</bundles_post_ra>
